<compile_context>
chip_gen: v7x
topology: tpu7x:2x2x1
jax: 0.10.0
libtpu: 0.0.40
codegen_flags: <defaults>
</compile_context>

<pallas_src>
import functools

import jax
import jax.numpy as jnp
from jax.experimental import pallas as pl
from jax.experimental.pallas import tpu as pltpu

_LANE = 128


def _vmem_capacity_bytes():
    """Trace-time VMEM query; conservative fallback if unavailable."""
    try:
        return int(pltpu.get_tpu_info().vmem_capacity_bytes)
    except Exception:
        return 64 * 1024 * 1024  # v7x per-TensorCore physical VMEM


def _pick_blocks(n, c_in, c_out, hw, max_block_bytes=None):
    """Choose (nb, tile): batch elements and pixel columns per grid step.

    Targets ~2-8 MiB of (x-block + out-block) per step, clamped so the
    double-buffered blocks stay well under VMEM on every TPU generation.
    """
    vmem_cap = _vmem_capacity_bytes()
    per_col = (c_in + c_out) * 4                      # f32 bytes per pixel column
    target = min(4 << 20, vmem_cap // 8)
    if max_block_bytes is not None:
        target = min(target, int(max_block_bytes))

    cols = max(_LANE, (target // per_col) // _LANE * _LANE)

    if hw > cols:
        # Big image: lane-dense tile (multiple of 128); ragged last block is a
        # masked boundary block.
        nb, tile = 1, cols
    else:
        # Small image: whole H*W per block (full-dim, always legal) and fold
        # several batch elements per step to amortize grid-step overhead.
        tile = hw
        nb = max(1, min(n, cols // max(hw, 1), 8))    # cap static unroll at 8

    # Keep >=4 grid steps when there is real work (v7x 2-TC load balance);
    # irrelevant for tiny problems.
    if 4 * n * hw * (c_in + c_out) > (16 << 20):
        while nb > 1 and pl.cdiv(n, nb) * pl.cdiv(hw, tile) < 4:
            nb = max(1, nb // 2)
    return nb, tile


def _make_redconv_kernel(nb, c_in, use_fma):
    def kernel(x_ref, w_ref, b_ref, o_ref):
        # x_ref : (nb, C_in, T)   lane-dense activation block
        # w_ref : (C_out, C_in)   resident weight
        # b_ref : (C_out, 1)      bias column (broadcasts over lanes)
        # o_ref : (nb, C_out, T)  lane-dense output block
        w = w_ref[...]
        b = b_ref[...].astype(jnp.float32)
        wf = w.astype(jnp.float32)
        for i in range(nb):                       # static unroll, nb <= 8
            x = x_ref[i]                          # (C_in, T)
            if use_fma:
                # Tiny contraction: unrolled VPU FMA (outer-product accumulate),
                # skips MXU push/pop latency; VALU has slack (kernel is mem-bound).
                xf = x.astype(jnp.float32)
                acc = wf[:, 0:1] * xf[0:1, :]
                for k in range(1, c_in):
                    acc = acc + wf[:, k:k + 1] * xf[k:k + 1, :]
            else:
                acc = jnp.dot(w, x, preferred_element_type=jnp.float32)
            o_ref[i] = jax.nn.sigmoid(acc + b).astype(o_ref.dtype)
    return kernel


@functools.partial(jax.jit, static_argnames=("max_block_bytes",))
def red_conv(x_nchw, weight, bias, max_block_bytes=None):
    """1x1 conv + sigmoid, native NCHW (no wrapper transposes / pads / slices).

    x_nchw : (N, C_in, H, W) float32
    weight : (C_out, C_in, 1, 1) float32  (PyTorch Conv2d layout)
    bias   : (C_out,) float32
    returns: (N, C_out, H, W) float32
    """
    n, c_in, h, w = x_nchw.shape
    c_out = weight.shape[0]
    hw = h * w

    x_flat = x_nchw.reshape(n, c_in, hw)          # free: contiguous NCHW view
    w_mat = weight.reshape(c_out, c_in)
    b_col = bias.reshape(c_out, 1)

    nb, tile = _pick_blocks(n, c_in, c_out, hw, max_block_bytes)
    grid = (pl.cdiv(n, nb), pl.cdiv(hw, tile))

    # Explicit VMEM budget: 2 x (x block + out block) double-buffered + weights.
    block_bytes = 4 * nb * (c_in + c_out) * tile
    w_bytes = 4 * (c_out * c_in + c_out)
    vmem_cap = _vmem_capacity_bytes()
    vmem_limit = int(min(max(2 * block_bytes + 2 * w_bytes + (2 << 20), 32 << 20),
                         vmem_cap * 3 // 4))

    cost = pl.CostEstimate(
        flops=2 * n * hw * c_in * c_out,
        transcendentals=n * hw * c_out,
        bytes_accessed=4 * (n * c_in * hw + n * c_out * hw + c_out * c_in + c_out),
    )

    kernel = _make_redconv_kernel(nb, c_in, use_fma=(c_in <= 8))

    out_flat = pl.pallas_call(
        kernel,
        out_shape=jax.ShapeDtypeStruct((n, c_out, hw), x_nchw.dtype),
        grid_spec=pltpu.PrefetchScalarGridSpec(
            num_scalar_prefetch=0,
            grid=grid,
            in_specs=[
                # last two dims: (C_in, tile) -> tile is a 128-multiple or the
                # full H*W, so blocks are lane-dense.
                pl.BlockSpec((nb, c_in, tile), lambda i, j: (i, 0, j)),
                # weight / bias: constant index_map -> resident, not re-DMA'd
                pl.BlockSpec((c_out, c_in), lambda i, j: (0, 0)),
                pl.BlockSpec((c_out, 1), lambda i, j: (0, 0)),
            ],
            out_specs=pl.BlockSpec((nb, c_out, tile), lambda i, j: (i, 0, j)),
        ),
        compiler_params=pltpu.CompilerParams(
            dimension_semantics=("parallel", "parallel"),
            vmem_limit_bytes=vmem_limit),
        cost_estimate=cost,
    )(x_flat, w_mat, b_col)

    return out_flat.reshape(n, c_out, h, w)


# ------------------------------ self-test ----------------------------------
def _reference(x, weight, bias):
    c_out, c_in = weight.shape[0], weight.shape[1]
    return jax.nn.sigmoid(
        jnp.einsum("nchw,oc->nohw", x, weight.reshape(c_out, c_in))
        + bias[None, :, None, None])


def _check(x, weight, bias, **kw):
    out = red_conv(x, weight, bias, **kw)
    jax.block_until_ready(out)
    ref = _reference(x, weight, bias)
    assert out.shape == ref.shape
    assert jnp.allclose(out, ref, atol=1e-5, rtol=1e-5), "mismatch vs reference"
    return out


def _make_inputs(n, c_in, c_out, h, w, key):
    k_x, k_w, k_b = jax.random.split(key, 3)
    bound = 1.0 / (c_in ** 0.5)   # nn.Conv2d default init range (fan_in = c_in)
    x = jax.random.normal(k_x, (n, c_in, h, w), dtype=jnp.float32)
    weight = jax.random.uniform(k_w, (c_out, c_in, 1, 1),
                                minval=-bound, maxval=bound, dtype=jnp.float32)
    bias = jax.random.uniform(k_b, (c_out,),
                              minval=-bound, maxval=bound, dtype=jnp.float32)
    return x, weight, bias


if __name__ == "__main__":
    key = jax.random.PRNGKey(0)
    keys = jax.random.split(key, 4)

    # Main case from the module spec: N=2, C_in=4, C_out=8, 16x16 image.
    # Exercises the batch-fused (nb=2) unrolled-FMA path, one block per step.
    _check(*_make_inputs(2, 4, 8, 16, 16, keys[0]))

    # Larger channels, H*W not a multiple of 128: nb=3 batch fusion + MXU dot.
    _check(*_make_inputs(3, 16, 32, 24, 40, keys[1]))

    # Force lane tiling with a ragged final hw block (nb=1) by capping block
    # bytes — exercises boundary-block masking on the pixel axis.
    _check(*_make_inputs(3, 16, 32, 24, 40, keys[2]), max_block_bytes=64 * 1024)

    # nb=2 with N=3 — exercises a partial (masked) boundary block on the batch
    # axis.
    _check(*_make_inputs(3, 4, 8, 16, 16, keys[3]), max_block_bytes=30 * 1024)

    print("KERNEL_OK")
</pallas_src>

<mosaic_0001>
module attributes {stable_mosaic.version = 11 : i64} {
  func.func @kernel(%arg0: i32, %arg1: i32, %arg2: memref<2x4x256xf32, #tpu.memory_space<vmem>>, %arg3: memref<8x4xf32, #tpu.memory_space<vmem>>, %arg4: memref<8x1xf32, #tpu.memory_space<vmem>>, %arg5: memref<2x8x256xf32, #tpu.memory_space<vmem>>) attributes {dimension_semantics = [#tpu.dimension_semantics<parallel>, #tpu.dimension_semantics<parallel>], iteration_bounds = array<i64: 1, 1>, scalar_prefetch = 0 : i64, scratch_operands = 0 : i64, tpu.core_type = #tpu.core_type<tc>, window_params = [{transform_indices = @transform_0, window_bounds = array<i64: 2, 4, 256>}, {pipeline_mode = #tpu.pipeline_mode<synchronous>, transform_indices = @transform_1, window_bounds = array<i64: 8, 4>}, {pipeline_mode = #tpu.pipeline_mode<synchronous>, transform_indices = @transform_2, window_bounds = array<i64: 8, 1>}, {transform_indices = @transform_3, window_bounds = array<i64: 2, 8, 256>}]} {
    %c0 = arith.constant 0 : index
    %c0_0 = arith.constant 0 : index
    %0 = vector.load %arg3[%c0, %c0_0] : memref<8x4xf32, #tpu.memory_space<vmem>>, vector<8x4xf32>
    %c0_1 = arith.constant 0 : index
    %c0_2 = arith.constant 0 : index
    %1 = vector.load %arg4[%c0_1, %c0_2] : memref<8x1xf32, #tpu.memory_space<vmem>>, vector<8x1xf32>
    %c0_3 = arith.constant 0 : index
    %c0_4 = arith.constant 0 : index
    %c0_5 = arith.constant 0 : index
    %2 = vector.load %arg2[%c0_3, %c0_4, %c0_5] : memref<2x4x256xf32, #tpu.memory_space<vmem>>, vector<1x4x256xf32>
    %3 = vector.shape_cast %2 : vector<1x4x256xf32> to vector<4x256xf32>
    %4 = vector.extract_strided_slice %0 {offsets = [0, 0], sizes = [8, 1], strides = [1, 1]} : vector<8x4xf32> to vector<8x1xf32>
    %5 = vector.extract_strided_slice %3 {offsets = [0, 0], sizes = [1, 256], strides = [1, 1]} : vector<4x256xf32> to vector<1x256xf32>
    %6 = vector.broadcast %4 : vector<8x1xf32> to vector<8x256xf32>
    %7 = vector.broadcast %5 : vector<1x256xf32> to vector<8x256xf32>
    %8 = arith.mulf %6, %7 : vector<8x256xf32>
    %9 = vector.extract_strided_slice %0 {offsets = [0, 1], sizes = [8, 1], strides = [1, 1]} : vector<8x4xf32> to vector<8x1xf32>
    %10 = vector.extract_strided_slice %3 {offsets = [1, 0], sizes = [1, 256], strides = [1, 1]} : vector<4x256xf32> to vector<1x256xf32>
    %11 = vector.broadcast %9 : vector<8x1xf32> to vector<8x256xf32>
    %12 = vector.broadcast %10 : vector<1x256xf32> to vector<8x256xf32>
    %13 = arith.mulf %11, %12 : vector<8x256xf32>
    %14 = arith.addf %8, %13 : vector<8x256xf32>
    %15 = vector.extract_strided_slice %0 {offsets = [0, 2], sizes = [8, 1], strides = [1, 1]} : vector<8x4xf32> to vector<8x1xf32>
    %16 = vector.extract_strided_slice %3 {offsets = [2, 0], sizes = [1, 256], strides = [1, 1]} : vector<4x256xf32> to vector<1x256xf32>
    %17 = vector.broadcast %15 : vector<8x1xf32> to vector<8x256xf32>
    %18 = vector.broadcast %16 : vector<1x256xf32> to vector<8x256xf32>
    %19 = arith.mulf %17, %18 : vector<8x256xf32>
    %20 = arith.addf %14, %19 : vector<8x256xf32>
    %21 = vector.extract_strided_slice %0 {offsets = [0, 3], sizes = [8, 1], strides = [1, 1]} : vector<8x4xf32> to vector<8x1xf32>
    %22 = vector.extract_strided_slice %3 {offsets = [3, 0], sizes = [1, 256], strides = [1, 1]} : vector<4x256xf32> to vector<1x256xf32>
    %23 = vector.broadcast %21 : vector<8x1xf32> to vector<8x256xf32>
    %24 = vector.broadcast %22 : vector<1x256xf32> to vector<8x256xf32>
    %25 = arith.mulf %23, %24 : vector<8x256xf32>
    %26 = arith.addf %20, %25 : vector<8x256xf32>
    %27 = vector.broadcast %1 : vector<8x1xf32> to vector<8x256xf32>
    %28 = arith.addf %26, %27 : vector<8x256xf32>
    %29 = arith.negf %28 : vector<8x256xf32>
    %30 = math.exp %29 : vector<8x256xf32>
    %cst = arith.constant 1.000000e+00 : f32
    %31 = vector.broadcast %cst : f32 to vector<8x256xf32>
    %32 = arith.addf %31, %30 : vector<8x256xf32>
    %33 = arith.divf %31, %32 : vector<8x256xf32>
    %c0_6 = arith.constant 0 : index
    %c0_7 = arith.constant 0 : index
    %c0_8 = arith.constant 0 : index
    %34 = vector.load %arg5[%c0_6, %c0_7, %c0_8] : memref<2x8x256xf32, #tpu.memory_space<vmem>>, vector<1x8x256xf32>
    %35 = vector.shape_cast %34 : vector<1x8x256xf32> to vector<8x256xf32>
    %36 = vector.shape_cast %33 : vector<8x256xf32> to vector<1x8x256xf32>
    tpu.vector_store %arg5[%c0_6, %c0_7, %c0_8], %36 {strides = array<i32>} : memref<2x8x256xf32, #tpu.memory_space<vmem>>, vector<1x8x256xf32>,
    %c1 = arith.constant 1 : index
    %c0_9 = arith.constant 0 : index
    %c0_10 = arith.constant 0 : index
    %37 = vector.load %arg2[%c1, %c0_9, %c0_10] : memref<2x4x256xf32, #tpu.memory_space<vmem>>, vector<1x4x256xf32>
    %38 = vector.shape_cast %37 : vector<1x4x256xf32> to vector<4x256xf32>
    %39 = vector.extract_strided_slice %0 {offsets = [0, 0], sizes = [8, 1], strides = [1, 1]} : vector<8x4xf32> to vector<8x1xf32>
    %40 = vector.extract_strided_slice %38 {offsets = [0, 0], sizes = [1, 256], strides = [1, 1]} : vector<4x256xf32> to vector<1x256xf32>
    %41 = vector.broadcast %39 : vector<8x1xf32> to vector<8x256xf32>
    %42 = vector.broadcast %40 : vector<1x256xf32> to vector<8x256xf32>
    %43 = arith.mulf %41, %42 : vector<8x256xf32>
    %44 = vector.extract_strided_slice %0 {offsets = [0, 1], sizes = [8, 1], strides = [1, 1]} : vector<8x4xf32> to vector<8x1xf32>
    %45 = vector.extract_strided_slice %38 {offsets = [1, 0], sizes = [1, 256], strides = [1, 1]} : vector<4x256xf32> to vector<1x256xf32>
    %46 = vector.broadcast %44 : vector<8x1xf32> to vector<8x256xf32>
    %47 = vector.broadcast %45 : vector<1x256xf32> to vector<8x256xf32>
    %48 = arith.mulf %46, %47 : vector<8x256xf32>
    %49 = arith.addf %43, %48 : vector<8x256xf32>
    %50 = vector.extract_strided_slice %0 {offsets = [0, 2], sizes = [8, 1], strides = [1, 1]} : vector<8x4xf32> to vector<8x1xf32>
    %51 = vector.extract_strided_slice %38 {offsets = [2, 0], sizes = [1, 256], strides = [1, 1]} : vector<4x256xf32> to vector<1x256xf32>
    %52 = vector.broadcast %50 : vector<8x1xf32> to vector<8x256xf32>
    %53 = vector.broadcast %51 : vector<1x256xf32> to vector<8x256xf32>
    %54 = arith.mulf %52, %53 : vector<8x256xf32>
    %55 = arith.addf %49, %54 : vector<8x256xf32>
    %56 = vector.extract_strided_slice %0 {offsets = [0, 3], sizes = [8, 1], strides = [1, 1]} : vector<8x4xf32> to vector<8x1xf32>
    %57 = vector.extract_strided_slice %38 {offsets = [3, 0], sizes = [1, 256], strides = [1, 1]} : vector<4x256xf32> to vector<1x256xf32>
    %58 = vector.broadcast %56 : vector<8x1xf32> to vector<8x256xf32>
    %59 = vector.broadcast %57 : vector<1x256xf32> to vector<8x256xf32>
    %60 = arith.mulf %58, %59 : vector<8x256xf32>
    %61 = arith.addf %55, %60 : vector<8x256xf32>
    %62 = vector.broadcast %1 : vector<8x1xf32> to vector<8x256xf32>
    %63 = arith.addf %61, %62 : vector<8x256xf32>
    %64 = arith.negf %63 : vector<8x256xf32>
    %65 = math.exp %64 : vector<8x256xf32>
    %cst_11 = arith.constant 1.000000e+00 : f32
    %66 = vector.broadcast %cst_11 : f32 to vector<8x256xf32>
    %67 = arith.addf %66, %65 : vector<8x256xf32>
    %68 = arith.divf %66, %67 : vector<8x256xf32>
    %c1_12 = arith.constant 1 : index
    %c0_13 = arith.constant 0 : index
    %c0_14 = arith.constant 0 : index
    %69 = vector.load %arg5[%c1_12, %c0_13, %c0_14] : memref<2x8x256xf32, #tpu.memory_space<vmem>>, vector<1x8x256xf32>
    %70 = vector.shape_cast %69 : vector<1x8x256xf32> to vector<8x256xf32>
    %71 = vector.shape_cast %68 : vector<8x256xf32> to vector<1x8x256xf32>
    tpu.vector_store %arg5[%c1_12, %c0_13, %c0_14], %71 {strides = array<i32>} : memref<2x8x256xf32, #tpu.memory_space<vmem>>, vector<1x8x256xf32>,
    return
  }
  func.func @transform_0(%arg0: i32, %arg1: i32) -> (i32, i32, i32) {
    %c0_i32 = arith.constant 0 : i32
    %c0_i32_0 = arith.constant 0 : i32
    return %arg0, %c0_i32, %arg1 : i32, i32, i32
  }
  func.func @transform_1(%arg0: i32, %arg1: i32) -> (i32, i32) {
    %c0_i32 = arith.constant 0 : i32
    %c0_i32_0 = arith.constant 0 : i32
    %c0_i32_1 = arith.constant 0 : i32
    return %c0_i32, %c0_i32_0 : i32, i32
  }
  func.func @transform_2(%arg0: i32, %arg1: i32) -> (i32, i32) {
    %c0_i32 = arith.constant 0 : i32
    %c0_i32_0 = arith.constant 0 : i32
    %c0_i32_1 = arith.constant 0 : i32
    return %c0_i32, %c0_i32_0 : i32, i32
  }
  func.func @transform_3(%arg0: i32, %arg1: i32) -> (i32, i32, i32) {
    %c0_i32 = arith.constant 0 : i32
    %c0_i32_0 = arith.constant 0 : i32
    return %arg0, %c0_i32, %arg1 : i32, i32, i32
  }
}

</mosaic_0001>

<bundles_post_ra>
// kernel: red_conv.1
= control target key start
LH: loop header
LB: loop body
LE: loop exit
PB: predicated region body
PF: predicated region fallthrough
CT: control target
= control target key end

     0   :  { %v285_v0 = vmov 0   ;;  %v286_v2 = vmov 2   ;;  %v287_v3 = vmov 1   ;;  %v288_v4 = vmov 3   ;;  %s333_s1 = inlined_call_operand.vmem [shape: f32[8,4], index: 1, kind: input, shape index: {}]   ;;  %s334_s2 = inlined_call_operand.vmem [shape: f32[8,1], index: 2, kind: input, shape index: {}]   ;;  %s335_s0 = inlined_call_operand.vmem [shape: f32[2,4,256], index: 0, kind: input, shape index: {}]   ;;  %s336_s3 = inlined_call_operand.vmem [shape: f32[2,8,256], index: 3, kind: output, shape index: {}]  }
   0x1   :  { %263 = vset.pattern.permute.xlu0 %v285_v0  ;;  %v14_v1 = vld [vmem:[%s333_s1] sm:$0xff]  ;;  %265 = vset.pattern.permute.xlu1 %v286_v2  ;;  %v23_v6 = vlaneseq  ;;  %v254_v11 = vld [vmem:[%s335_s0 + $0x8] sm:$0xff] }
   0x2   :  { %19 = vperm.xlu0 %263, %v14_v1   ;;  %70 = vperm.xlu1 %265, %v14_v1   ;;  %v15_v5 = vld [vmem:[%s334_s2] sm:$0xff] }
   0x3   :  { %v24_v7 = vshrl.u32 %v23_v6, 7  ;;  %v16_v10 = vld [vmem:[%s335_s0] sm:$0xff] }
   0x5   :  { %v25_v8 = vsub.s32 0, %v24_v7  ;;  %v29_v9 = vsub.s32 4, %v24_v7  ;;  %v75_v12 = vsub.s32 2, %v24_v7  ;;  %v79_v13 = vsub.s32 6, %v24_v7 }
   0x6   :  { %264 = vset.pattern.permute.xlu0 %v287_v3  ;;  %266 = vset.pattern.permute.xlu1 %v288_v4  ;;  %v49_v14 = vsub.s32 1, %v24_v7  ;;  %v53_v15 = vsub.s32 5, %v24_v7  ;;  %v101_v16 = vsub.s32 3, %v24_v7  ;;  %v105_v17 = vsub.s32 7, %v24_v7 }
   0x7   :  { %44 = vperm.xlu0 %264, %v14_v1   ;;  %96 = vperm.xlu1 %266, %v14_v1   ;;  %v26_v18 = vrot.slane %v16_v10, %v25_v8  ;;  %v30_v19 = vrot.slane %v16_v10, %v29_v9  ;;  %v148_v20 = vrot.slane %v254_v11, %v25_v8 }
   0x8   :  { %v152_v21 = vrot.slane %v254_v11, %v29_v9  ;;  %v76_v22 = vrot.slane %v16_v10, %v75_v12  ;;  %v80_v23 = vrot.slane %v16_v10, %v79_v13  ;;  %v190_v24 = vrot.slane %v254_v11, %v75_v12 }
   0x9   :  { %v194_v25 = vrot.slane %v254_v11, %v79_v13  ;;  %v50_v26 = vrot.slane %v16_v10, %v49_v14  ;;  %v54_v27 = vrot.slane %v16_v10, %v53_v15  ;;  %v168_v28 = vrot.slane %v254_v11, %v49_v14 }
   0xa   :  { %v172_v29 = vrot.slane %v254_v11, %v53_v15  ;;  %v102_v30 = vrot.slane %v16_v10, %v101_v16  ;;  %v106_v31 = vrot.slane %v16_v10, %v105_v17  ;;  %v212_v32 = vrot.slane %v254_v11, %v101_v16 }
   0xb   :  { %267 = vset.pattern.permute.xlu1 %v285_v0  ;;  %268 = vset.pattern.permute.xlu0 %v285_v0  ;;  %v216_v33 = vrot.slane %v254_v11, %v105_v17  ;;  %v36_v35 = vrot.slane %v26_v18, %v25_v8  ;;  %v40_v36 = vrot.slane %v30_v19, %v25_v8 }
   0xc   :  { %123 = vperm.xlu1 %267, %v15_v5   ;;  %v158_v37 = vrot.slane %v148_v20, %v25_v8  ;;  %v162_v38 = vrot.slane %v152_v21, %v25_v8  ;;  %v86_v40 = vrot.slane %v76_v22, %v75_v12  ;;  %v90_v41 = vrot.slane %v80_v23, %v75_v12 }
   0xd   :  { %v200_v42 = vrot.slane %v190_v24, %v75_v12  ;;  %v204_v43 = vrot.slane %v194_v25, %v75_v12  ;;  %v60_v44 = vrot.slane %v50_v26, %v49_v14  ;;  %v64_v45 = vrot.slane %v54_v27, %v49_v14 }
   0xe   :  { %v178_v46 = vrot.slane %v168_v28, %v49_v14  ;;  %v182_v47 = vrot.slane %v172_v29, %v49_v14  ;;  %v112_v48 = vrot.slane %v102_v30, %v101_v16  ;;  %v116_v49 = vrot.slane %v106_v31, %v101_v16 }
   0xf   :  { %v222_v50 = vrot.slane %v212_v32, %v101_v16  ;;  %v226_v51 = vrot.slane %v216_v33, %v101_v16 }
  0x81   :  { %v20_v34 = vpop.permute.xlu0 %19  ;;  %v71_v39 = vpop.permute.xlu1 %70 }
  0x82   :  { %v41_v52 = vmul.f32 %v36_v35, %v20_v34  ;;  %v42_v53 = vmul.f32 %v40_v36, %v20_v34  ;;  %v163_v54 = vmul.f32 %v158_v37, %v20_v34  ;;  %v164_v55 = vmul.f32 %v162_v38, %v20_v34 }
  0x83   :  { %v91_v56 = vmul.f32 %v86_v40, %v71_v39  ;;  %v92_v57 = vmul.f32 %v90_v41, %v71_v39  ;;  %v205_v58 = vmul.f32 %v200_v42, %v71_v39  ;;  %v206_v59 = vmul.f32 %v204_v43, %v71_v39 }
  0x86   :  { %v45_v60 = vpop.permute.xlu0 %44  ;;  %v97_v61 = vpop.permute.xlu1 %96 }
  0x87   :  { %v65_v62 = vmul.f32 %v60_v44, %v45_v60  ;;  %v66_v63 = vmul.f32 %v64_v45, %v45_v60  ;;  %v183_v0 = vmul.f32 %v178_v46, %v45_v60  ;;  %v184_v1 = vmul.f32 %v182_v47, %v45_v60 }
  0x88   :  { %v117_v2 = vmul.f32 %v112_v48, %v97_v61  ;;  %v118_v3 = vmul.f32 %v116_v49, %v97_v61  ;;  %v227_v4 = vmul.f32 %v222_v50, %v97_v61  ;;  %v228_v5 = vmul.f32 %v226_v51, %v97_v61 }
  0x89   :  { %v67_v6 = vadd.f32 %v65_v62, %v41_v52  ;;  %v68_v7 = vadd.f32 %v66_v63, %v42_v53  ;;  %v185_v8 = vadd.f32 %v183_v0, %v163_v54  ;;  %v186_v9 = vadd.f32 %v184_v1, %v164_v55 }
  0x8b   :  { %v93_v10 = vadd.f32 %v91_v56, %v67_v6  ;;  %v94_v11 = vadd.f32 %v92_v57, %v68_v7  ;;  %v207_v12 = vadd.f32 %v205_v58, %v185_v8  ;;  %v208_v13 = vadd.f32 %v206_v59, %v186_v9  ;;  %v124_v14 = vpop.permute.xlu1 %123 }
  0x8d   :  { %v119_v15 = vadd.f32 %v117_v2, %v93_v10  ;;  %v120_v16 = vadd.f32 %v118_v3, %v94_v11  ;;  %v229_v17 = vadd.f32 %v227_v4, %v207_v12  ;;  %v230_v18 = vadd.f32 %v228_v5, %v208_v13 }
  0x8f   :  { %v126_v19 = vadd.f32 %v124_v14, %v119_v15  ;;  %v127_v20 = vadd.f32 %v124_v14, %v120_v16  ;;  %v231_v21 = vadd.f32 %v229_v17, %v124_v14  ;;  %v232_v22 = vadd.f32 %v230_v18, %v124_v14 }
  0x91   :  { %v252_v23 = vmul.f32 -1.442695, %v126_v19  ;;  %v253_v24 = vmul.f32 -1.442695, %v127_v20  ;;  %v255_v25 = vmul.f32 -1.442695, %v231_v21 }
  0x92   :  { %v256_v26 = vmul.f32 -1.442695, %v232_v22 }
  0x93   :  { %269 = vpow2.f32 %v252_v23 }
  0x94   :  { %271 = vpow2.f32 %v253_v24 }
  0x95   :  { %273 = vpow2.f32 %v255_v25 }
  0x96   :  { %275 = vpow2.f32 %v256_v26 }
  0x9d   :  { %v270_v27 = vpop.eup %269 }
  0x9e   :  { %v272_v28 = vpop.eup %271  ;;  %v134_v29 = vadd.f32 1.0, %v270_v27 }
  0x9f   :  { %v274_v30 = vpop.eup %273  ;;  %v135_v31 = vadd.f32 1.0, %v272_v28 }
  0xa0   :  { %v276_v32 = vpop.eup %275  ;;  %277 = vrcp.f32 %v134_v29  ;;  %v239_v33 = vadd.f32 1.0, %v274_v30 }
  0xa1   :  { %279 = vrcp.f32 %v135_v31  ;;  %v240_v34 = vadd.f32 1.0, %v276_v32 }
  0xa2   :  { %281 = vrcp.f32 %v239_v33 }
  0xa3   :  { %283 = vrcp.f32 %v240_v34 }
  0xaa   :  { %v278_v35 = vpop.eup %277 }
  0xab   :  { %v280_v36 = vpop.eup %279  ;;  %140 = vst [vmem:[%s336_s3] sm:$0xff] %v278_v35 }
  0xac   :  { %v282_v37 = vpop.eup %281  ;;  %141 = vst [vmem:[%s336_s3 + $0x8] sm:$0xff] %v280_v36 }
  0xad   :  { %v284_v38 = vpop.eup %283  ;;  %257 = vst [vmem:[%s336_s3 + $0x10] sm:$0xff] %v282_v37 }
  0xae   :  { %258 = vst [vmem:[%s336_s3 + $0x18] sm:$0xff] %v284_v38 }

</bundles_post_ra>
